<compile_context>
chip_gen: v5e
topology: v5e:2x2
jax: 0.10.0
libtpu: 0.0.40
codegen_flags: <defaults>
</compile_context>

<pallas_src>
import functools
import math

import jax
import jax.numpy as jnp
from jax import lax
from jax.experimental import pallas as pl
from jax.experimental.pallas import tpu as pltpu

C_PAD = 128   # lane-dense padded feature width (out_channel padded to 128 lanes)


def _round_up(a, b):
    return (a + b - 1) // b * b


def _tpu_config():
    """Per-generation knobs: scoped-VMEM budget and element-chain dtype."""
    try:
        kind = jax.devices()[0].device_kind.lower()
    except Exception:
        kind = ""
    if "v7" in kind or "7x" in kind:
        # v7x: 64 MiB VMEM per TensorCore; leave headroom for the megacore split.
        return 48 * 1024 * 1024, jnp.bfloat16
    if "v6" in kind:
        return 80 * 1024 * 1024, jnp.bfloat16   # bf16 VALU/EUP available
    if "v5" in kind:
        return 80 * 1024 * 1024, jnp.float32    # no bf16 VALU/EUP on v5e
    return 32 * 1024 * 1024, jnp.float32        # conservative default (v4 / interpret)


def project_kernel(x_ref, w_ref, h_ref, ad_ref, *, c_out):
    # One bf16 MXU matmul yields BOTH the projected features and the per-node
    # attention logits a_src / a_dst (attention vectors were folded into the
    # weight matrix columns C_PAD, C_PAD+1 in the wrapper).
    h = jnp.dot(x_ref[...], w_ref[...], preferred_element_type=jnp.float32)
    val = h[:, :C_PAD]
    # Bake a ones-column at lane c_out so stage 2 gets the softmax denominator
    # for free out of the aggregation matmul (no XLU row-sum per tile).
    lane = lax.broadcasted_iota(jnp.int32, (1, C_PAD), 1)
    val = jnp.where(lane == c_out, 1.0, val)
    h_ref[...] = val.astype(jnp.bfloat16)
    ad_ref[...] = h[:, C_PAD:C_PAD + 2]          # [a_src | a_dst] per node


def gat_attn_kernel(nnz_ref, a_dst_ref, a_src_ref, adj_ref, h_ref, bias_ref,
                    out_ref, m_ref, acc_ref, *, c_out, tk, resident_h, elem_dtype):
    q = pl.program_id(0)
    k = pl.program_id(1)

    @pl.when(k == 0)
    def _():
        m_ref[...] = jnp.full(m_ref.shape, -1e30, dtype=jnp.float32)
        acc_ref[...] = jnp.zeros(acc_ref.shape, dtype=jnp.float32)

    # Block-sparse gating: skip all VPU/EUP/MXU work on tiles with no edges.
    @pl.when(nnz_ref[q, k] > 0)
    def _():
        # e[i, j] = LeakyReLU(a_dst[i] + a_src[j], slope=0.2) for edge j -> i.
        e = a_dst_ref[...].astype(elem_dtype) + a_src_ref[...].astype(elem_dtype)
        e = jnp.maximum(e, 0.2 * e)              # LeakyReLU without a select
        mask = adj_ref[...] != 0                 # int8 compare, no f32 unpack
        e = jnp.where(mask, e, -1e30)

        # Online (streaming) softmax; running max stays in f32.
        m_prev = m_ref[...]
        m_new = jnp.maximum(
            m_prev, jnp.max(e, axis=-1, keepdims=True).astype(jnp.float32))
        scale = jnp.exp(m_prev - m_new)
        # Keep this mask select: on an all-masked row tile m_new == -1e30 and
        # exp(e - m_new) == 1 would otherwise corrupt the accumulator.
        p = jnp.where(mask, jnp.exp(e - m_new.astype(elem_dtype)), 0.0)

        if resident_h:
            start = pl.multiple_of(k * tk, tk)
            h_tile = h_ref[pl.ds(start, tk), :]
        else:
            h_tile = h_ref[...]
        # h_tile column c_out is all ones -> acc[:, c_out] accumulates the
        # softmax denominator l (row-sum of p folded into the MXU matmul).
        acc_ref[...] = scale * acc_ref[...] + jnp.dot(
            p.astype(jnp.bfloat16), h_tile, preferred_element_type=jnp.float32)
        m_ref[...] = m_new

    @pl.when(k == pl.num_programs(1) - 1)
    def _():
        acc = acc_ref[...]
        l = acc[:, c_out:c_out + 1]
        denom = jnp.maximum(l, 1e-30)            # guard isolated / padded rows
        out = acc * pl.reciprocal(denom, approx=True) + bias_ref[...]
        lane = lax.broadcasted_iota(jnp.int32, (1, C_PAD), 1)
        out = jnp.where(lane == c_out, 0.0, out)  # drop the denominator column
        # TODO(synk): nn.Dropout(p=0.5) is identity in eval mode; training-mode RNG
        # masking not emitted here.
        # F.normalize: row-wise L2 with eps=1e-12 (rsqrt rides the EUP slot).
        sumsq = jnp.sum(out * out, axis=-1, keepdims=True)
        out_ref[...] = out * lax.rsqrt(jnp.maximum(sumsq, 1e-24))


def graph_conv_forward(x, edge_indices, w, att_src, att_dst, bias, *, tq=256, tk=512):
    """GATConv(heads=1, self-loops) + eval-mode Dropout + F.normalize, via Pallas."""
    n, c_in = x.shape
    c_out = w.shape[1]
    assert c_out < C_PAD, "need a spare lane at column c_out for the l-fold trick"

    vmem_limit, elem_dtype = _tpu_config()

    n_pad = _round_up(n, math.lcm(tq, tk))
    n_q, n_k = n_pad // tq, n_pad // tk

    # --- Fold attention vectors into the projection weight (rides the MXU). ---
    w32 = w.astype(jnp.float32)
    w_aug = jnp.zeros((c_in, 2 * C_PAD), jnp.float32)
    w_aug = w_aug.at[:, :c_out].set(w32)
    w_aug = w_aug.at[:, C_PAD:C_PAD + 1].set(w32 @ att_src.reshape(c_out, 1))
    w_aug = w_aug.at[:, C_PAD + 1:C_PAD + 2].set(w32 @ att_dst.reshape(c_out, 1))
    w_aug = w_aug.astype(jnp.bfloat16)

    x_pad = jnp.zeros((n_pad, c_in), jnp.bfloat16).at[:n].set(x.astype(jnp.bfloat16))

    # --- Stage 1: bf16 projection with fused epilogue (bf16 values + logits). ---
    h_bf16, ad = pl.pallas_call(
        functools.partial(project_kernel, c_out=c_out),
        out_shape=(jax.ShapeDtypeStruct((n_pad, C_PAD), jnp.bfloat16),
                   jax.ShapeDtypeStruct((n_pad, 2), jnp.float32)),
        grid_spec=pltpu.PrefetchScalarGridSpec(
            num_scalar_prefetch=0,
            grid=(n_pad // tq,),
            in_specs=[pl.BlockSpec((tq, c_in), lambda i: (i, 0)),
                      pl.BlockSpec((c_in, 2 * C_PAD), lambda i: (0, 0))],
            out_specs=(pl.BlockSpec((tq, C_PAD), lambda i: (i, 0)),
                       pl.BlockSpec((tq, 2), lambda i: (i, 0)))),
        compiler_params=pltpu.CompilerParams(
            dimension_semantics=("parallel",),
            vmem_limit_bytes=vmem_limit),
    )(x_pad, w_aug)

    a_src_row = ad[:, 0].reshape(1, n_pad)     # (1, N) source logits
    a_dst_col = ad[:, 1:2]                     # (N, 1) target logits

    # --- Dense int8 adjacency mask adj[target, source], with self-loops. ---
    # Note: duplicate parallel edges are merged (PyG would softmax each separately).
    # TODO(synk): replace the dense O(N^2) adjacency (and the per-call scatter) with
    # cached, bit-packed or CSR block-sparse metadata + data-dependent index_maps so
    # empty tiles skip the adjacency DMA too, not just the compute.
    src, dst = edge_indices[0], edge_indices[1]
    adj = jnp.zeros((n_pad, n_pad), jnp.int8)
    adj = adj.at[dst, src].set(1)
    adj = adj.at[jnp.arange(n), jnp.arange(n)].set(1)

    # Per-(q, k) tile edge counts, scalar-prefetched to SMEM; empty tiles skipped
    # inside the kernel via pl.when.
    nnz_tiles = jnp.sum(
        adj.reshape(n_q, tq, n_k, tk).astype(jnp.int32), axis=(1, 3))

    bias_pad = jnp.zeros((1, C_PAD), jnp.float32).at[:, :c_out].set(
        bias.reshape(1, c_out).astype(jnp.float32))

    # --- Stage 2: keep the bf16 value matrix VMEM-resident across the source (k)
    #     axis when it fits the per-generation budget; otherwise stream tiles. ---
    fixed_bytes = (2 * tq * tk                       # int8 adjacency (double-buffered)
                   + 2 * (tq + tk + C_PAD) * 4       # a_dst / a_src / bias
                   + 2 * tq * C_PAD * 4              # output (double-buffered)
                   + tq * (C_PAD + 1) * 4)           # acc + m scratch
    resident_h = fixed_bytes + 2 * n_pad * C_PAD * 2 <= int(0.75 * vmem_limit)
    if resident_h:
        h_spec = pl.BlockSpec((n_pad, C_PAD), lambda q, k, nnz: (0, 0))
    else:
        h_spec = pl.BlockSpec((tk, C_PAD), lambda q, k, nnz: (k, 0))

    out_pad = pl.pallas_call(
        functools.partial(gat_attn_kernel, c_out=c_out, tk=tk,
                          resident_h=resident_h, elem_dtype=elem_dtype),
        out_shape=jax.ShapeDtypeStruct((n_pad, C_PAD), jnp.float32),
        grid_spec=pltpu.PrefetchScalarGridSpec(
            num_scalar_prefetch=1,
            grid=(n_q, n_k),                                        # source axis last
            in_specs=[
                pl.BlockSpec((tq, 1), lambda q, k, nnz: (q, 0)),    # a_dst (targets)
                pl.BlockSpec((1, tk), lambda q, k, nnz: (0, k)),    # a_src (sources)
                pl.BlockSpec((tq, tk), lambda q, k, nnz: (q, k)),   # int8 adj tile
                h_spec,                                             # bf16 values
                pl.BlockSpec((1, C_PAD), lambda q, k, nnz: (0, 0)), # bias (resident)
            ],
            out_specs=pl.BlockSpec((tq, C_PAD), lambda q, k, nnz: (q, 0)),
            scratch_shapes=[pltpu.VMEM((tq, 1), jnp.float32),       # running max m
                            pltpu.VMEM((tq, C_PAD), jnp.float32)]   # f32 accumulator
        ),
        compiler_params=pltpu.CompilerParams(
            dimension_semantics=("parallel", "arbitrary"),
            vmem_limit_bytes=vmem_limit),
    )(nnz_tiles, a_dst_col, a_src_row, adj, h_bf16, bias_pad)

    return out_pad[:n, :c_out]


def reference_forward(x, edge_indices, w, att_src, att_dst, bias):
    """Plain-JAX dense reference (same merged-duplicate-edge convention)."""
    n = x.shape[0]
    h = x @ w
    a_src = h @ att_src.reshape(-1, 1)
    a_dst = h @ att_dst.reshape(-1, 1)
    e = a_dst + a_src.T
    e = jnp.where(e > 0, e, 0.2 * e)
    adj = jnp.zeros((n, n), bool)
    adj = adj.at[edge_indices[1], edge_indices[0]].set(True)
    adj = adj.at[jnp.arange(n), jnp.arange(n)].set(True)
    e = jnp.where(adj, e, -jnp.inf)
    alpha = jax.nn.softmax(e, axis=-1)
    out = alpha @ h + bias.reshape(1, -1)
    norm = jnp.sqrt(jnp.sum(out * out, axis=-1, keepdims=True))
    return out / jnp.maximum(norm, 1e-12)


def glorot_uniform(key, shape, fan_in, fan_out):
    a = jnp.sqrt(6.0 / (fan_in + fan_out))
    return jax.random.uniform(key, shape, jnp.float32, -a, a)


if __name__ == "__main__":
    N, C_IN, C_OUT, E = 600, 16, 32, 2400

    key = jax.random.PRNGKey(0)
    k_x, k_src, k_dst, k_w, k_as, k_ad, k_b = jax.random.split(key, 7)

    x = jax.random.normal(k_x, (N, C_IN), jnp.float32)
    edge_indices = jnp.stack(
        [jax.random.randint(k_src, (E,), 0, N),    # source nodes
         jax.random.randint(k_dst, (E,), 0, N)],   # target nodes
        axis=0)

    w = glorot_uniform(k_w, (C_IN, C_OUT), C_IN, C_OUT)       # lin weight (in, out)
    att_src = glorot_uniform(k_as, (1, C_OUT), 1, C_OUT)      # attention vec (source)
    att_dst = glorot_uniform(k_ad, (1, C_OUT), 1, C_OUT)      # attention vec (target)
    bias = 0.1 * jax.random.normal(k_b, (C_OUT,), jnp.float32)

    # Default production tiles (tq=256, tk=512); N=600 pads to 1024 nodes, giving a
    # (4 parallel q) x (2 online-softmax k) grid that also exercises the empty-tile
    # skip path on the padded rows.
    out = graph_conv_forward(x, edge_indices, w, att_src, att_dst, bias)
    jax.block_until_ready(out)

    assert out.shape == (N, C_OUT)
    assert bool(jnp.all(jnp.isfinite(out)))

    ref = reference_forward(x, edge_indices, w, att_src, att_dst, bias)
    max_err = float(jnp.max(jnp.abs(out - ref)))
    assert max_err < 5e-2, f"max abs error vs reference too high: {max_err}"

    print("KERNEL_OK")
</pallas_src>

<mosaic_0001>
module attributes {stable_mosaic.version = 11 : i64} {
  func.func @project_kernel(%arg0: i32, %arg1: memref<256x16xbf16, #tpu.memory_space<vmem>>, %arg2: memref<16x256xbf16, #tpu.memory_space<vmem>>, %arg3: memref<256x128xbf16, #tpu.memory_space<vmem>>, %arg4: memref<256x2xf32, #tpu.memory_space<vmem>>) attributes {dimension_semantics = [#tpu.dimension_semantics<parallel>], iteration_bounds = array<i64: 4>, scalar_prefetch = 0 : i64, scratch_operands = 0 : i64, tpu.core_type = #tpu.core_type<tc>, window_params = [{transform_indices = @transform_0, window_bounds = array<i64: 256, 16>}, {pipeline_mode = #tpu.pipeline_mode<synchronous>, transform_indices = @transform_1, window_bounds = array<i64: 16, 256>}, {transform_indices = @transform_2, window_bounds = array<i64: 256, 128>}, {transform_indices = @transform_3, window_bounds = array<i64: 256, 2>}]} {
    %c0 = arith.constant 0 : index
    %c0_0 = arith.constant 0 : index
    %0 = vector.load %arg1[%c0, %c0_0] : memref<256x16xbf16, #tpu.memory_space<vmem>>, vector<256x16xbf16>
    %c0_1 = arith.constant 0 : index
    %c0_2 = arith.constant 0 : index
    %1 = vector.load %arg2[%c0_1, %c0_2] : memref<16x256xbf16, #tpu.memory_space<vmem>>, vector<16x256xbf16>
    %cst = arith.constant dense<0.000000e+00> : vector<256x256xf32>
    %2 = tpu.matmul %0, %1, %cst {dimension_numbers = #tpu.dot_dimension_numbers<[1], [0], [0], [1], [0, 0, 1, 1], [], []>} : vector<256x16xbf16>, vector<16x256xbf16>, vector<256x256xf32> -> vector<256x256xf32>
    %3 = vector.extract_strided_slice %2 {offsets = [0, 0], sizes = [256, 128], strides = [1, 1]} : vector<256x256xf32> to vector<256x128xf32>
    %4 = tpu.iota {dimensions = array<i32: 1>} : vector<1x128xi32>
    %c32_i32 = arith.constant 32 : i32
    %5 = vector.broadcast %c32_i32 : i32 to vector<1x128xi32>
    %6 = arith.cmpi eq, %4, %5 : vector<1x128xi32>
    %cst_3 = arith.constant 1.000000e+00 : f32
    %7 = vector.shape_cast %6 : vector<1x128xi1> to vector<1x128xi1>
    %8 = vector.broadcast %7 : vector<1x128xi1> to vector<256x128xi1>
    %9 = vector.broadcast %cst_3 : f32 to vector<256x128xf32>
    %10 = arith.select %8, %9, %3 : vector<256x128xi1>, vector<256x128xf32>
    %11 = arith.truncf %10 : vector<256x128xf32> to vector<256x128xbf16>
    %c0_4 = arith.constant 0 : index
    %c0_5 = arith.constant 0 : index
    %12 = vector.load %arg3[%c0_4, %c0_5] : memref<256x128xbf16, #tpu.memory_space<vmem>>, vector<256x128xbf16>
    tpu.vector_store %arg3[%c0_4, %c0_5], %11 {strides = array<i32>} : memref<256x128xbf16, #tpu.memory_space<vmem>>, vector<256x128xbf16>,
    %13 = vector.extract_strided_slice %2 {offsets = [0, 128], sizes = [256, 2], strides = [1, 1]} : vector<256x256xf32> to vector<256x2xf32>
    %c0_6 = arith.constant 0 : index
    %c0_7 = arith.constant 0 : index
    %14 = vector.load %arg4[%c0_6, %c0_7] : memref<256x2xf32, #tpu.memory_space<vmem>>, vector<256x2xf32>
    tpu.vector_store %arg4[%c0_6, %c0_7], %13 {strides = array<i32>} : memref<256x2xf32, #tpu.memory_space<vmem>>, vector<256x2xf32>,
    return
  }
  func.func @transform_0(%arg0: i32) -> (i32, i32) {
    %c0_i32 = arith.constant 0 : i32
    %c0_i32_0 = arith.constant 0 : i32
    return %arg0, %c0_i32 : i32, i32
  }
  func.func @transform_1(%arg0: i32) -> (i32, i32) {
    %c0_i32 = arith.constant 0 : i32
    %c0_i32_0 = arith.constant 0 : i32
    %c0_i32_1 = arith.constant 0 : i32
    return %c0_i32, %c0_i32_0 : i32, i32
  }
  func.func @transform_2(%arg0: i32) -> (i32, i32) {
    %c0_i32 = arith.constant 0 : i32
    %c0_i32_0 = arith.constant 0 : i32
    return %arg0, %c0_i32 : i32, i32
  }
  func.func @transform_3(%arg0: i32) -> (i32, i32) {
    %c0_i32 = arith.constant 0 : i32
    %c0_i32_0 = arith.constant 0 : i32
    return %arg0, %c0_i32 : i32, i32
  }
}

</mosaic_0001>

<bundles_post_ra>
// kernel: tpu_custom_call.1
= control target key start
LH: loop header
LB: loop body
LE: loop exit
PB: predicated region body
PF: predicated region fallthrough
CT: control target
= control target key end

     0   :  { %9 = vsyncpa [#allocation3], 0  ;;  %s1454_s0 = inlined_call_operand.vmem [shape: bf16[1024,16], index: 0, kind: input, shape index: {}]   ;;  %s1455_s1 = inlined_call_operand.vmem [shape: bf16[16,256], index: 1, kind: input, shape index: {}]   ;;  %s1456_s2 = inlined_call_operand.hbm [shape: bf16[1024,128], index: 2, kind: output, shape index: {0}]   ;;  %s1457_s3 = inlined_call_operand.vmem [shape: f32[1024,2], index: 3, kind: output, shape index: {1}]  }
   0x1   :  { %11 = vsyncpa [#allocation3 + $0x1], 0  ;;  %s1145_s12 = smov 0   ;;  %s1147_s13 = smov 0  }
   0x2   :  { %s1149_s14 = smov 0   ;;  %s1151_s15 = smov 0  }
   0x3 LB: > { %s1166_s16 = sadd.s32 4294967295, %s1121_s15   ;;  %s784_s17 = sadd.s32 4294967294, %s1121_s15   ;;  %s1121_s15 = sphi %s1151_s15, %s1463_s15   ;;  %s1117_s14 = sphi %s1149_s14, %s1462_s14   ;;  %s1113_s13 = sphi %s1147_s13, %s1461_s13   ;;  %s1109_s12 = sphi %s1145_s12, %s1460_s12  }
   0x4   : > { %s1170_s18 = sadd.s32 1, %s1121_s15   ;;  %s71_s19 = sadd.s32 1, %s1117_s14 }
   0x5   : > { %s68_s20 = ssub.s32 %s1121_s15, %s1170_s18  ;;  %p81_p0 = scmp.ne.s32.totalorder %s1117_s14, %s1113_s13 }
   0x6   : > { %p69_p1 = scmp.eq.s32.totalorder %s68_s20, 0  ;;  %p82_p2 = scmp.eq.s32.totalorder %s1166_s16, 3 }
   0x7   : > { %p87_p3 = scmp.ne.s32.totalorder %s1113_s13, %s1109_s12  ;;  %p88_p4 = scmp.eq.s32.totalorder %s784_s17, 3 }
   0x8   : > { %s1181_s21 = scalar_select %p69_p1, %s1117_s14, %s71_s19  }
   0x9   : > { %p1183_p5 = por %p82_p2, %p81_p0  ;;  %p1187_p6 = por %p88_p4, %p87_p3 }
   0xa   : > { %p787_p7 = scmp.ge.s32.totalorder %s1121_s15, 1  ;;  %p144_p8 = scmp.lt.s32.totalorder %s1121_s15, 5 }
   0xc   : > { %p145_p9 = pnand %p787_p7, %p144_p8 }
   0xd   : > { %s789_s5 = sshll.u32 (!%p145_p9), %s1166_s16, 5  ;;  %s163_s20 = sand.u32 (!%p145_p9), 1, %s1113_s13  }
   0xe   : > { %148 = sbr.rel (%p145_p9) target bundleno = 284 (0x11c), region = 28  ;;  %p174_p10 = scmp.lt.s32.totalorder (!%p145_p9), %s789_s5, 127 }
   0xf   : > { %s788_s24 = sshll.u32 (!%p145_p9), %s163_s20, 7  ;;  %s920_s26 = sshll.u32 (!%p145_p9), %s1166_s16, 7 }
  0x10   : > { %s1284_s25 = scalar_lea.vmem (!%p145_p9), [#allocation2], %s788_s24  ;;  %s689_s29 = scalar_lea.hbm (!%p145_p9), %s1456_s2, %s920_s26 }
  0x11   : > { %s690_s16 = sshll.u32 (!%p145_p9), %s1284_s25, 4  ;;  %s692_s30 = sshll.u32 (!%p145_p9), %s689_s29, 4  ;;  %s691_s16 = int_to_ptr.vmem [resolvable:$true] %s690_s16  ;;  %s693_s30 = int_to_ptr.hbm [resolvable:$true] %s692_s30 }
  0x12   : > { %s673_s4 = scalar_lea.sflag (!%p145_p9), [#allocation3], %s163_s20 }
  0x13   : > { %v859_v0 = vld [vmem:[%s1455_s1] sm:$0xf]  ;;  %v919_v1 = vld [vmem:[%s1455_s1 + $0x4] sm:$0xf0]  ;;  %v918_v2 = vld [vmem:[%s1455_s1 + $0x4] sm:$0xf]  ;;  %v538_v22 = vlaneseq }
  0x14   : > { %v860_v3 = vor.u32 %v919_v1, %v859_v0  ;;  %v861_v4 = vld [vmem:[%s1455_s1 + $0x8] sm:$0xf0]  ;;  %s1465_s5 = smov (!%p174_p10, %s789_s5), 127  ;;  %vm311_vm0 = vcmask 130048   ;;  %vm639_vm1 = vcmask 15360  }
  0x15   : > { %v864_v5 = vor.u32 %v918_v2, %v861_v4  ;;  %s790_s6 = sshll.u32 %s1465_s5, 2  ;;  %s792_s10 = sshll.u32 %s1465_s5, 3  ;;  %v1268_v25 = vand.u32 127, %v538_v22 }
  0x16   : > { %367 = vmatpush.bf16.msra.mxu0 %v860_v3  ;;  %1016 = vmatpush.bf16.msra.mxu2 %v860_v3  ;;  %s1212_s9 = scalar_lea.vmem %s1454_s0, %s790_s6  ;;  %s1266_s19 = scalar_lea.vmem %s1457_s3, %s792_s10 }
  0x17   : > { %1017 = vmatpush.bf16.msra.mxu3 %v864_v5  ;;  %456 = vmatpush.bf16.msra.mxu1 %v864_v5  ;;  %v902_v6 = vld [vmem:[%s1212_s9] sm:$0xff]  ;;  %v903_v8 = vld [vmem:[%s1212_s9 + $0x8] sm:$0xff]  ;;  %v904_v10 = vld [vmem:[%s1212_s9 + $0x10] sm:$0xff]  ;;  %vm540_vm2 = vcmp.eq.s32.totalorder %v1268_v25, 32  ;;  %s1073_s5 = sshra.s32 %s693_s30, 4  ;;  %s1074_s5 = int_to_ptr.hbm [resolvable:$true] %s1073_s5 }
  0x18   : > { %v910_v7 = vld [vmem:[%s1212_s9 + $0x40] sm:$0xff]  ;;  %v911_v9 = vld [vmem:[%s1212_s9 + $0x48] sm:$0xff]  ;;  %v912_v11 = vld [vmem:[%s1212_s9 + $0x50] sm:$0xff]  ;;  %s1075_s6 = scalar_lea.hbm %s1074_s5, 128  ;;  %p1080_p0 = scmp.lt.s32.totalorder %s1074_s5, %s1456_s2 }
  0x19   : > { %865 = vmatmul.msk.bf16.vlgmr.msra.gmra.mxu0 %vm311_vm0, %v902_v6  ;;  %873 = vmatmul.msk.bf16.vlgmr.msra.gmra.mxu2 %vm311_vm0, %v910_v7  ;;  %v905_v12 = vld [vmem:[%s1212_s9 + $0x18] sm:$0xff]  ;;  %v906_v14 = vld [vmem:[%s1212_s9 + $0x20] sm:$0xff]  ;;  %v907_v16 = vld [vmem:[%s1212_s9 + $0x28] sm:$0xff]  ;;  %p1076_p11 = scmp.ne.s32.totalorder %s1074_s5, %s1075_s6 }
  0x1a   : > { %889 = vmatmul.msk.bf16.vlgmr.msra.gmra.mxu3 %vm311_vm0, %v910_v7  ;;  %881 = vmatmul.msk.bf16.vlgmr.msra.gmra.mxu1 %vm311_vm0, %v902_v6  ;;  %v913_v13 = vld [vmem:[%s1212_s9 + $0x58] sm:$0xff]  ;;  %v914_v15 = vld [vmem:[%s1212_s9 + $0x60] sm:$0xff]  ;;  %v915_v17 = vld [vmem:[%s1212_s9 + $0x68] sm:$0xff] }
  0x1b   : > { %v908_v18 = vld [vmem:[%s1212_s9 + $0x30] sm:$0xff]  ;;  %v909_v20 = vld [vmem:[%s1212_s9 + $0x38] sm:$0xff]  ;;  %p1077_p12 = pnand %p1076_p11, %p1183_p5 }
  0x1c   : > { %v916_v19 = vld [vmem:[%s1212_s9 + $0x70] sm:$0xff]  ;;  %v917_v21 = vld [vmem:[%s1212_s9 + $0x78] sm:$0xff]  ;;  %s1079_s9 = scalar_lea.hbm %s1456_s2, 512 }
  0x1d   : > { %p1078_p13 = pneg %p1077_p12  ;;  %p1081_p1 = scmp.lt.s32.totalorder %s1079_s9, %s1075_s6 }
  0x1f   : > { %p1082_p2 = por %p1081_p1, %p1080_p0 }
  0x21   : > { %p1083_p3 = pnand %p1082_p2, %p1078_p13 }
  0x29   : > { %866 = vmatmul.msk.bf16.gmra.mxu0 %vm311_vm0, %v903_v8  ;;  %874 = vmatmul.msk.bf16.gmra.mxu2 %vm311_vm0, %v911_v9 }
  0x2a   : > { %890 = vmatmul.msk.bf16.gmra.mxu3 %vm311_vm0, %v911_v9  ;;  %882 = vmatmul.msk.bf16.gmra.mxu1 %vm311_vm0, %v903_v8 }
  0x39   : > { %867 = vmatmul.msk.bf16.gmra.mxu0 %vm311_vm0, %v904_v10  ;;  %875 = vmatmul.msk.bf16.gmra.mxu2 %vm311_vm0, %v912_v11 }
  0x3a   : > { %891 = vmatmul.msk.bf16.gmra.mxu3 %vm311_vm0, %v912_v11  ;;  %883 = vmatmul.msk.bf16.gmra.mxu1 %vm311_vm0, %v904_v10 }
  0x49   : > { %868 = vmatmul.msk.bf16.gmra.mxu0 %vm311_vm0, %v905_v12  ;;  %876 = vmatmul.msk.bf16.gmra.mxu2 %vm311_vm0, %v913_v13 }
  0x4a   : > { %892 = vmatmul.msk.bf16.gmra.mxu3 %vm311_vm0, %v913_v13  ;;  %884 = vmatmul.msk.bf16.gmra.mxu1 %vm311_vm0, %v905_v12 }
  0x59   : > { %869 = vmatmul.msk.bf16.gmra.mxu0 %vm311_vm0, %v906_v14  ;;  %877 = vmatmul.msk.bf16.gmra.mxu2 %vm311_vm0, %v914_v15 }
  0x5a   : > { %893 = vmatmul.msk.bf16.gmra.mxu3 %vm311_vm0, %v914_v15  ;;  %885 = vmatmul.msk.bf16.gmra.mxu1 %vm311_vm0, %v906_v14 }
  0x69   : > { %870 = vmatmul.msk.bf16.gmra.mxu0 %vm311_vm0, %v907_v16  ;;  %878 = vmatmul.msk.bf16.gmra.mxu2 %vm311_vm0, %v915_v17 }
  0x6a   : > { %894 = vmatmul.msk.bf16.gmra.mxu3 %vm311_vm0, %v915_v17  ;;  %886 = vmatmul.msk.bf16.gmra.mxu1 %vm311_vm0, %v907_v16 }
  0x79   : > { %871 = vmatmul.msk.bf16.gmra.mxu0 %vm311_vm0, %v908_v18  ;;  %879 = vmatmul.msk.bf16.gmra.mxu2 %vm311_vm0, %v916_v19 }
  0x7a   : > { %895 = vmatmul.msk.bf16.gmra.mxu3 %vm311_vm0, %v916_v19  ;;  %887 = vmatmul.msk.bf16.gmra.mxu1 %vm311_vm0, %v908_v18 }
  0x89   : > { %872 = vmatmul.msk.bf16.gmra.mxu0 %vm311_vm0, %v909_v20  ;;  %880 = vmatmul.msk.bf16.gmra.mxu2 %vm311_vm0, %v917_v21 }
  0x8a   : > { %896 = vmatmul.msk.bf16.gmra.mxu3 %vm311_vm0, %v917_v21  ;;  %888 = vmatmul.msk.bf16.gmra.mxu1 %vm311_vm0, %v909_v20 }
  0x96   : > { %v369_v23 = vpop.f32.mrf.mxu0 }
  0x97   : > { %v458_v24 = vpop.f32.mrf.mxu1  ;;  %v543_v29 = vsel %vm540_vm2, 1.0, %v369_v23 }
  0x98   : > { %640 = vst.msk [vmem:[%s1266_s19] sm:$0xff] %vm639_vm1, %v458_v24 }
  0x9c   : > { %v409_v26 = vpop.f32.mrf.mxu2 }
  0x9d   : > { %v498_v27 = vpop.f32.mrf.mxu3  ;;  %v559_v34 = vsel %vm540_vm2, 1.0, %v409_v26 }
  0x9e   : > { %656 = vst.msk [vmem:[%s1266_s19 + $0x80] sm:$0xff] %vm639_vm1, %v498_v27  ;;  %v371_v28 = vpop.f32.mrf.mxu0 }
  0x9f   : > { %v544_v30 = vsel %vm540_vm2, 1.0, %v371_v28  ;;  %v460_v31 = vpop.f32.mrf.mxu1 }
  0xa0   : > { %v924_v32 = vpack.c.bf16 %v544_v30, %v543_v29  ;;  %641 = vst.msk [vmem:[%s1266_s19 + $0x8] sm:$0xff] %vm639_vm1, %v460_v31 }
  0xa2   : > { %925 = vst [vmem:[%s1284_s25] sm:$0xff] %v924_v32  }
  0xa4   : > { %v411_v33 = vpop.f32.mrf.mxu2 }
  0xa5   : > { %v560_v35 = vsel %vm540_vm2, 1.0, %v411_v33  ;;  %v500_v36 = vpop.f32.mrf.mxu3 }
  0xa6   : > { %v964_v37 = vpack.c.bf16 %v560_v35, %v559_v34  ;;  %657 = vst.msk [vmem:[%s1266_s19 + $0x88] sm:$0xff] %vm639_vm1, %v500_v36  ;;  %v374_v38 = vpop.f32.mrf.mxu0 }
  0xa7   : > { %v463_v39 = vpop.f32.mrf.mxu1  ;;  %v545_v43 = vsel %vm540_vm2, 1.0, %v374_v38 }
  0xa8   : > { %1008 = vst [vmem:[%s1284_s25 + $0x40] sm:$0xff] %v964_v37  }
  0xa9   : > { %642 = vst.msk [vmem:[%s1266_s19 + $0x10] sm:$0xff] %vm639_vm1, %v463_v39 }
  0xac   : > { %v414_v40 = vpop.f32.mrf.mxu2 }
  0xad   : > { %v503_v41 = vpop.f32.mrf.mxu3  ;;  %v561_v48 = vsel %vm540_vm2, 1.0, %v414_v40 }
  0xae   : > { %658 = vst.msk [vmem:[%s1266_s19 + $0x90] sm:$0xff] %vm639_vm1, %v503_v41  ;;  %v376_v42 = vpop.f32.mrf.mxu0 }
  0xaf   : > { %v546_v44 = vsel %vm540_vm2, 1.0, %v376_v42  ;;  %v465_v45 = vpop.f32.mrf.mxu1 }
  0xb0   : > { %v929_v46 = vpack.c.bf16 %v546_v44, %v545_v43  ;;  %643 = vst.msk [vmem:[%s1266_s19 + $0x18] sm:$0xff] %vm639_vm1, %v465_v45 }
  0xb2   : > { %1001 = vst [vmem:[%s1284_s25 + $0x8] sm:$0xff] %v929_v46  }
  0xb4   : > { %v416_v47 = vpop.f32.mrf.mxu2 }
  0xb5   : > { %v562_v49 = vsel %vm540_vm2, 1.0, %v416_v47  ;;  %v505_v50 = vpop.f32.mrf.mxu3 }
  0xb6   : > { %v969_v51 = vpack.c.bf16 %v562_v49, %v561_v48  ;;  %659 = vst.msk [vmem:[%s1266_s19 + $0x98] sm:$0xff] %vm639_vm1, %v505_v50  ;;  %v379_v52 = vpop.f32.mrf.mxu0 }
  0xb7   : > { %v468_v53 = vpop.f32.mrf.mxu1  ;;  %v547_v57 = vsel %vm540_vm2, 1.0, %v379_v52 }
  0xb8   : > { %1009 = vst [vmem:[%s1284_s25 + $0x48] sm:$0xff] %v969_v51  }
  0xb9   : > { %644 = vst.msk [vmem:[%s1266_s19 + $0x20] sm:$0xff] %vm639_vm1, %v468_v53 }
  0xbc   : > { %v419_v54 = vpop.f32.mrf.mxu2 }
  0xbd   : > { %v508_v55 = vpop.f32.mrf.mxu3  ;;  %v563_v62 = vsel %vm540_vm2, 1.0, %v419_v54 }
  0xbe   : > { %660 = vst.msk [vmem:[%s1266_s19 + $0xa0] sm:$0xff] %vm639_vm1, %v508_v55  ;;  %v381_v56 = vpop.f32.mrf.mxu0 }
  0xbf   : > { %v548_v58 = vsel %vm540_vm2, 1.0, %v381_v56  ;;  %v470_v59 = vpop.f32.mrf.mxu1 }
  0xc0   : > { %v934_v60 = vpack.c.bf16 %v548_v58, %v547_v57  ;;  %645 = vst.msk [vmem:[%s1266_s19 + $0x28] sm:$0xff] %vm639_vm1, %v470_v59 }
  0xc2   : > { %1002 = vst [vmem:[%s1284_s25 + $0x10] sm:$0xff] %v934_v60  }
  0xc4   : > { %v421_v61 = vpop.f32.mrf.mxu2 }
  0xc5   : > { %v564_v63 = vsel %vm540_vm2, 1.0, %v421_v61  ;;  %v510_v0 = vpop.f32.mrf.mxu3 }
  0xc6   : > { %v974_v1 = vpack.c.bf16 %v564_v63, %v563_v62  ;;  %661 = vst.msk [vmem:[%s1266_s19 + $0xa8] sm:$0xff] %vm639_vm1, %v510_v0  ;;  %v384_v2 = vpop.f32.mrf.mxu0 }
  0xc7   : > { %v473_v3 = vpop.f32.mrf.mxu1  ;;  %v549_v7 = vsel %vm540_vm2, 1.0, %v384_v2 }
  0xc8   : > { %1010 = vst [vmem:[%s1284_s25 + $0x50] sm:$0xff] %v974_v1  }
  0xc9   : > { %646 = vst.msk [vmem:[%s1266_s19 + $0x30] sm:$0xff] %vm639_vm1, %v473_v3 }
  0xcc   : > { %v424_v4 = vpop.f32.mrf.mxu2 }
  0xcd   : > { %v513_v5 = vpop.f32.mrf.mxu3  ;;  %v565_v12 = vsel %vm540_vm2, 1.0, %v424_v4 }
  0xce   : > { %662 = vst.msk [vmem:[%s1266_s19 + $0xb0] sm:$0xff] %vm639_vm1, %v513_v5  ;;  %v386_v6 = vpop.f32.mrf.mxu0 }
  0xcf   : > { %v550_v8 = vsel %vm540_vm2, 1.0, %v386_v6  ;;  %v475_v9 = vpop.f32.mrf.mxu1 }
  0xd0   : > { %v939_v10 = vpack.c.bf16 %v550_v8, %v549_v7  ;;  %647 = vst.msk [vmem:[%s1266_s19 + $0x38] sm:$0xff] %vm639_vm1, %v475_v9 }
  0xd2   : > { %1003 = vst [vmem:[%s1284_s25 + $0x18] sm:$0xff] %v939_v10  }
  0xd4   : > { %v426_v11 = vpop.f32.mrf.mxu2 }
  0xd5   : > { %v566_v13 = vsel %vm540_vm2, 1.0, %v426_v11  ;;  %v515_v14 = vpop.f32.mrf.mxu3 }
  0xd6   : > { %v979_v15 = vpack.c.bf16 %v566_v13, %v565_v12  ;;  %663 = vst.msk [vmem:[%s1266_s19 + $0xb8] sm:$0xff] %vm639_vm1, %v515_v14  ;;  %v389_v16 = vpop.f32.mrf.mxu0 }
  0xd7   : > { %v478_v17 = vpop.f32.mrf.mxu1  ;;  %v551_v21 = vsel %vm540_vm2, 1.0, %v389_v16 }
  0xd8   : > { %1011 = vst [vmem:[%s1284_s25 + $0x58] sm:$0xff] %v979_v15  }
  0xd9   : > { %648 = vst.msk [vmem:[%s1266_s19 + $0x40] sm:$0xff] %vm639_vm1, %v478_v17 }
  0xdc   : > { %v429_v18 = vpop.f32.mrf.mxu2 }
  0xdd   : > { %v518_v19 = vpop.f32.mrf.mxu3  ;;  %v567_v27 = vsel %vm540_vm2, 1.0, %v429_v18 }
  0xde   : > { %664 = vst.msk [vmem:[%s1266_s19 + $0xc0] sm:$0xff] %vm639_vm1, %v518_v19  ;;  %v391_v20 = vpop.f32.mrf.mxu0 }
  0xdf   : > { %v552_v22 = vsel %vm540_vm2, 1.0, %v391_v20  ;;  %v480_v23 = vpop.f32.mrf.mxu1 }
  0xe0   : > { %v944_v24 = vpack.c.bf16 %v552_v22, %v551_v21  ;;  %649 = vst.msk [vmem:[%s1266_s19 + $0x48] sm:$0xff] %vm639_vm1, %v480_v23 }
  0xe2   : > { %1004 = vst [vmem:[%s1284_s25 + $0x20] sm:$0xff] %v944_v24  }
  0xe4   : > { %v431_v26 = vpop.f32.mrf.mxu2 }
  0xe5   : > { %v568_v28 = vsel %vm540_vm2, 1.0, %v431_v26  ;;  %v520_v29 = vpop.f32.mrf.mxu3 }
  0xe6   : > { %v984_v30 = vpack.c.bf16 %v568_v28, %v567_v27  ;;  %665 = vst.msk [vmem:[%s1266_s19 + $0xc8] sm:$0xff] %vm639_vm1, %v520_v29  ;;  %v394_v31 = vpop.f32.mrf.mxu0 }
  0xe7   : > { %v483_v32 = vpop.f32.mrf.mxu1  ;;  %v553_v36 = vsel %vm540_vm2, 1.0, %v394_v31 }
  0xe8   : > { %1012 = vst [vmem:[%s1284_s25 + $0x60] sm:$0xff] %v984_v30  }
  0xe9   : > { %650 = vst.msk [vmem:[%s1266_s19 + $0x50] sm:$0xff] %vm639_vm1, %v483_v32 }
  0xec   : > { %v434_v33 = vpop.f32.mrf.mxu2 }
  0xed   : > { %v523_v34 = vpop.f32.mrf.mxu3  ;;  %v569_v41 = vsel %vm540_vm2, 1.0, %v434_v33 }
  0xee   : > { %666 = vst.msk [vmem:[%s1266_s19 + $0xd0] sm:$0xff] %vm639_vm1, %v523_v34  ;;  %v396_v35 = vpop.f32.mrf.mxu0 }
  0xef   : > { %v554_v37 = vsel %vm540_vm2, 1.0, %v396_v35  ;;  %v485_v38 = vpop.f32.mrf.mxu1 }
  0xf0   : > { %v949_v39 = vpack.c.bf16 %v554_v37, %v553_v36  ;;  %651 = vst.msk [vmem:[%s1266_s19 + $0x58] sm:$0xff] %vm639_vm1, %v485_v38 }
  0xf2   : > { %1005 = vst [vmem:[%s1284_s25 + $0x28] sm:$0xff] %v949_v39  }
  0xf4   : > { %v436_v40 = vpop.f32.mrf.mxu2 }
  0xf5   : > { %v570_v42 = vsel %vm540_vm2, 1.0, %v436_v40  ;;  %v525_v43 = vpop.f32.mrf.mxu3 }
  0xf6   : > { %v989_v44 = vpack.c.bf16 %v570_v42, %v569_v41  ;;  %667 = vst.msk [vmem:[%s1266_s19 + $0xd8] sm:$0xff] %vm639_vm1, %v525_v43  ;;  %v399_v45 = vpop.f32.mrf.mxu0 }
  0xf7   : > { %v488_v46 = vpop.f32.mrf.mxu1  ;;  %v555_v50 = vsel %vm540_vm2, 1.0, %v399_v45 }
  0xf8   : > { %1013 = vst [vmem:[%s1284_s25 + $0x68] sm:$0xff] %v989_v44  }
  0xf9   : > { %652 = vst.msk [vmem:[%s1266_s19 + $0x60] sm:$0xff] %vm639_vm1, %v488_v46 }
  0xfc   : > { %v439_v47 = vpop.f32.mrf.mxu2 }
  0xfd   : > { %v528_v48 = vpop.f32.mrf.mxu3  ;;  %v571_v55 = vsel %vm540_vm2, 1.0, %v439_v47 }
  0xfe   : > { %668 = vst.msk [vmem:[%s1266_s19 + $0xe0] sm:$0xff] %vm639_vm1, %v528_v48  ;;  %v401_v49 = vpop.f32.mrf.mxu0 }
  0xff   : > { %v556_v51 = vsel %vm540_vm2, 1.0, %v401_v49  ;;  %v490_v52 = vpop.f32.mrf.mxu1 }
 0x100   : > { %v954_v53 = vpack.c.bf16 %v556_v51, %v555_v50  ;;  %653 = vst.msk [vmem:[%s1266_s19 + $0x68] sm:$0xff] %vm639_vm1, %v490_v52 }
 0x102   : > { %1006 = vst [vmem:[%s1284_s25 + $0x30] sm:$0xff] %v954_v53  }
 0x104   : > { %v441_v54 = vpop.f32.mrf.mxu2 }
 0x105   : > { %v572_v56 = vsel %vm540_vm2, 1.0, %v441_v54  ;;  %v530_v57 = vpop.f32.mrf.mxu3 }
 0x106   : > { %v994_v58 = vpack.c.bf16 %v572_v56, %v571_v55  ;;  %669 = vst.msk [vmem:[%s1266_s19 + $0xe8] sm:$0xff] %vm639_vm1, %v530_v57  ;;  %v404_v59 = vpop.f32.mrf.mxu0 }
 0x107   : > { %v493_v60 = vpop.f32.mrf.mxu1  ;;  %v557_v0 = vsel %vm540_vm2, 1.0, %v404_v59 }
 0x108   : > { %1014 = vst [vmem:[%s1284_s25 + $0x70] sm:$0xff] %v994_v58  }
 0x109   : > { %654 = vst.msk [vmem:[%s1266_s19 + $0x70] sm:$0xff] %vm639_vm1, %v493_v60 }
 0x10c   : > { %v444_v61 = vpop.f32.mrf.mxu2 }
 0x10d   : > { %v533_v62 = vpop.f32.mrf.mxu3  ;;  %v573_v5 = vsel %vm540_vm2, 1.0, %v444_v61 }
 0x10e   : > { %670 = vst.msk [vmem:[%s1266_s19 + $0xf0] sm:$0xff] %vm639_vm1, %v533_v62  ;;  %v406_v63 = vpop.f32.mrf.mxu0 }
 0x10f   : > { %v558_v1 = vsel %vm540_vm2, 1.0, %v406_v63  ;;  %v495_v2 = vpop.f32.mrf.mxu1 }
 0x110   : > { %v959_v3 = vpack.c.bf16 %v558_v1, %v557_v0  ;;  %655 = vst.msk [vmem:[%s1266_s19 + $0x78] sm:$0xff] %vm639_vm1, %v495_v2 }
 0x112   : > { %1007 = vst [vmem:[%s1284_s25 + $0x38] sm:$0xff] %v959_v3  }
 0x114   : > { %v446_v4 = vpop.f32.mrf.mxu2 }
 0x115   : > { %v574_v6 = vsel %vm540_vm2, 1.0, %v446_v4  ;;  %v535_v7 = vpop.f32.mrf.mxu3 }
 0x116   : > { %v999_v8 = vpack.c.bf16 %v574_v6, %v573_v5  ;;  %671 = vst.msk [vmem:[%s1266_s19 + $0xf8] sm:$0xff] %vm639_vm1, %v535_v7 }
 0x118   : > { %1015 = vst [vmem:[%s1284_s25 + $0x78] sm:$0xff] %v999_v8  }
 0x119   : > { %1086 = shalt.err (!%p1083_p3)
}
 0x11a   : > { %s1123_s17 = smov 64   ;;  %s1124_s19 = smov 4  }
 0x11b   : > { %1018 = dma.vmem_to_hbm [thread:$0]  (%p1183_p5), %s691_s16, 2048, %s693_s30, %s673_s4, %s1123_s17, %s1123_s17, %s1124_s19  }
 0x11c PF: > { %p1024_p4 = scmp.ge.s32.totalorder %s1121_s15, 2  ;;  %s711_s20 = sand.u32 1, %s1109_s12  }
 0x11d   : > { %s712_s24 = scalar_lea.sflag [#allocation3], %s711_s20 }
 0x11e   : > { %p1021_p7 = pnand %p1024_p4, %p1187_p6 }
 0x120   : > { %p1022_p8 = pneg %p1021_p7 }
 0x122   : > { %1104 = dma.done.wait (%p1022_p8), %s712_s24, 2048  }
 0x123   : > { %1106 = vsyncadd (%p1022_p8), %s712_s24, 4294965248  ;;  %p14_p9 = scmp.ge.s32.totalorder %s1170_s18, 6   ;;  %s1460_s12 = smov %s1113_s13 }
 0x124   : > { %s1461_s13 = smov %s1117_s14  ;;  %s1462_s14 = smov %s1181_s21 }
 0x125   : > { %s1463_s15 = smov %s1170_s18  ;;  %16 = sbr.rel (!%p14_p9) target bundleno = 3 (0x3), region = 75 }
 0x12a   :  { %726 = vsyncpa [#allocation3], 1 }
 0x12b   :  { %728 = vsyncpa [#allocation3 + $0x1], 1 }

</bundles_post_ra>
